<compile_context>
chip_gen: v6e
topology: v6e:2x2x1
jax: 0.10.0
libtpu: 0.0.40
codegen_flags: <defaults>
</compile_context>

<pallas_src>
import functools

import jax
import jax.numpy as jnp
from jax.experimental import pallas as pl
from jax.experimental.pallas import tpu as pltpu

BN_EPS = 1e-5


def _round_up(x, m):
    return (x + m - 1) // m * m


# ---------------------------------------------------------------------------
# Pass 1: conv-as-matmul (bf16 operands, f32 accumulation) + per-tile BN stats.
# ---------------------------------------------------------------------------
def _conv_stats_kernel(p_ref, w_ref, y_ref, stats_ref):
    # p_ref: [TM, Kp] bf16    w_ref: [Kp, Cp] bf16 (VMEM-resident across the grid)
    # y_ref: [TM, Cp] f32     stats_ref: [1, 2, Cp] f32 (per-tile sum / sumsq)
    y = jnp.dot(p_ref[...], w_ref[...], preferred_element_type=jnp.float32)
    y_ref[...] = y
    s = jnp.sum(y, axis=0, keepdims=True)        # [1, Cp]
    sq = jnp.sum(y * y, axis=0, keepdims=True)   # [1, Cp]
    stats_ref[...] = jnp.concatenate([s, sq], axis=0)[None, :, :]


# ---------------------------------------------------------------------------
# Pass 2: fused BN affine (precomputed per-channel scale/shift) + ReLU.
# ---------------------------------------------------------------------------
def _bn_relu_kernel(y_ref, scale_ref, shift_ref, o_ref):
    o_ref[...] = jnp.maximum(y_ref[...] * scale_ref[...] + shift_ref[...], 0.0)


def _im2col_nhwc(x_nhwc, ksize, stride, padding):
    """[N,H,W,C] -> [N*OH*OW, ksize*ksize*C] with (kh, kw, cin) fastest ordering."""
    n, h, w, c = x_nhwc.shape
    xp = jnp.pad(x_nhwc, ((0, 0), (padding, padding), (padding, padding), (0, 0)))
    oh = (h + 2 * padding - ksize) // stride + 1
    ow = (w + 2 * padding - ksize) // stride + 1
    cols = []
    for kh in range(ksize):
        for kw in range(ksize):
            patch = xp[:, kh:kh + stride * oh:stride, kw:kw + stride * ow:stride, :]
            cols.append(patch)                       # [N, OH, OW, C]
    cols = jnp.stack(cols, axis=3)                   # [N, OH, OW, K*K, C]
    return cols.reshape(n * oh * ow, ksize * ksize * c), oh, ow


@functools.partial(jax.jit, static_argnames=("ksize", "stride", "padding", "tm"))
def conv_bn_relu(x_nchw, weight, bias, gamma, beta, *,
                 ksize, stride, padding, tm=128):
    """x_nchw: [N, Cin, H, W]; weight: [Cout, Cin, K, K] (PyTorch layouts).

    `tm` is the M-tile; use 512-1024 for production-size layers (still well within
    v7x's 64 MiB VMEM with double-buffered bf16 tiles).
    """
    del bias  # Exactly cancelled by training-mode BN mean subtraction.

    n, cin, h, w = x_nchw.shape
    cout = weight.shape[0]
    kkc = ksize * ksize * cin

    x_nhwc = jnp.transpose(x_nchw, (0, 2, 3, 1))
    patches, oh, ow = _im2col_nhwc(x_nhwc, ksize, stride, padding)   # [M, K*K*Cin]
    m = n * oh * ow

    # Lane-dense padding: reduction dim and Cout to multiples of 128, M to TM.
    kp = _round_up(kkc, 128)
    cp = _round_up(cout, 128)
    tm = max(8, min(tm, _round_up(m, 8)))
    mp = _round_up(m, tm)
    n_tiles = mp // tm

    # bf16 MXU operands (f32 accumulation inside the kernel); zero padding is exact.
    patches_p = jnp.pad(patches, ((0, mp - m), (0, kp - kkc))).astype(jnp.bfloat16)

    # Match patch ordering (kh, kw, cin): [Cout,Cin,K,K] -> [K*K*Cin, Cout], then pad.
    w_mat = jnp.transpose(weight, (2, 3, 1, 0)).reshape(kkc, cout)
    w_p = jnp.pad(w_mat, ((0, kp - kkc), (0, cp - cout))).astype(jnp.bfloat16)

    cost = pl.CostEstimate(
        flops=2 * mp * kp * cp,
        transcendentals=0,
        bytes_accessed=(patches_p.size * 2 + w_p.size * 2
                        + mp * cp * 4 + n_tiles * 2 * cp * 4),
    )

    y_flat, stats = pl.pallas_call(
        _conv_stats_kernel,
        out_shape=(
            jax.ShapeDtypeStruct((mp, cp), jnp.float32),
            jax.ShapeDtypeStruct((n_tiles, 2, cp), jnp.float32),
        ),
        grid=(n_tiles,),
        in_specs=[
            pl.BlockSpec((tm, kp), lambda i: (i, 0)),
            pl.BlockSpec((kp, cp), lambda i: (0, 0)),   # weights stay resident
        ],
        out_specs=(
            pl.BlockSpec((tm, cp), lambda i: (i, 0)),
            pl.BlockSpec((1, 2, cp), lambda i: (i, 0, 0)),
        ),
        compiler_params=pltpu.CompilerParams(
            dimension_semantics=("parallel",)),          # megacore split on v7x
        cost_estimate=cost,
    )(patches_p, w_p)

    # Finalize BN batch statistics (tiny per-channel math).  Zero-padded rows /
    # channels contribute exact zeros, so dividing by the true M is correct.
    ssum = jnp.sum(stats[:, 0, :], axis=0)
    ssq = jnp.sum(stats[:, 1, :], axis=0)
    mean = ssum / m
    var = jnp.maximum(ssq / m - mean * mean, 0.0)
    inv = jax.lax.rsqrt(var + BN_EPS)

    g_p = jnp.pad(gamma.astype(jnp.float32), (0, cp - cout))
    b_p = jnp.pad(beta.astype(jnp.float32), (0, cp - cout))
    scale = (g_p * inv).reshape(1, cp)
    shift = (b_p - mean * g_p * inv).reshape(1, cp)

    out_flat = pl.pallas_call(
        _bn_relu_kernel,
        out_shape=jax.ShapeDtypeStruct((mp, cp), jnp.float32),
        grid=(n_tiles,),
        in_specs=[
            pl.BlockSpec((tm, cp), lambda i: (i, 0)),
            pl.BlockSpec((1, cp), lambda i: (0, 0)),
            pl.BlockSpec((1, cp), lambda i: (0, 0)),
        ],
        out_specs=pl.BlockSpec((tm, cp), lambda i: (i, 0)),
        compiler_params=pltpu.CompilerParams(
            dimension_semantics=("parallel",)),
    )(y_flat, scale, shift)

    # Slice off padding, back to NCHW only at the module boundary.
    out = out_flat[:m, :cout].reshape(n, oh, ow, cout)
    return jnp.transpose(out, (0, 3, 1, 2))


def _reference(x_nchw, weight, bias, gamma, beta, stride, padding, *, cast_bf16=False):
    xw, ww = x_nchw, weight
    if cast_bf16:
        xw = xw.astype(jnp.bfloat16)
        ww = ww.astype(jnp.bfloat16)
    y = jax.lax.conv_general_dilated(
        xw, ww, window_strides=(stride, stride),
        padding=[(padding, padding), (padding, padding)],
        dimension_numbers=("NCHW", "OIHW", "NCHW"),
        preferred_element_type=jnp.float32)
    y = y + bias.reshape(1, -1, 1, 1)
    mean = jnp.mean(y, axis=(0, 2, 3), keepdims=True)
    var = jnp.mean((y - mean) ** 2, axis=(0, 2, 3), keepdims=True)
    y = (y - mean) * jax.lax.rsqrt(var + BN_EPS)
    y = y * gamma.reshape(1, -1, 1, 1) + beta.reshape(1, -1, 1, 1)
    return jnp.maximum(y, 0.0)


if __name__ == "__main__":
    # Module hyperparameters (small, consistent with ConvBN(dim_in, dim_out, k, stride, pad)).
    dim_in, dim_out, ksize, stride, padding = 4, 8, 3, 1, 1
    N, H, W = 2, 16, 16

    key = jax.random.PRNGKey(0)
    kx, kw, kb, kg, kbeta = jax.random.split(key, 5)

    x = jax.random.normal(kx, (N, dim_in, H, W), dtype=jnp.float32)
    weight = jax.random.normal(kw, (dim_out, dim_in, ksize, ksize), dtype=jnp.float32) * 0.1
    bias = jax.random.normal(kb, (dim_out,), dtype=jnp.float32) * 0.1
    gamma = 1.0 + 0.1 * jax.random.normal(kg, (dim_out,), dtype=jnp.float32)
    beta = 0.1 * jax.random.normal(kbeta, (dim_out,), dtype=jnp.float32)

    out = conv_bn_relu(x, weight, bias, gamma, beta,
                       ksize=ksize, stride=stride, padding=padding)
    out = jax.block_until_ready(out)

    ref_f32 = _reference(x, weight, bias, gamma, beta, stride, padding)
    ref_bf16 = _reference(x, weight, bias, gamma, beta, stride, padding, cast_bf16=True)

    assert out.shape == ref_f32.shape == (N, dim_out, H, W)
    # Module-semantics check (f32 conv reference); slack covers bf16 MXU operands.
    assert jnp.allclose(out, ref_f32, atol=3e-2, rtol=3e-2)
    # Tight structural check vs. a reference using the same bf16 conv operands.
    assert jnp.allclose(out, ref_bf16, atol=1e-3, rtol=1e-3)

    print("KERNEL_OK")
</pallas_src>

<mosaic_0001>
module attributes {stable_mosaic.version = 11 : i64} {
  func.func @_bn_relu_kernel(%arg0: i32, %arg1: memref<128x128xf32, #tpu.memory_space<vmem>>, %arg2: memref<1x128xf32, #tpu.memory_space<vmem>>, %arg3: memref<1x128xf32, #tpu.memory_space<vmem>>, %arg4: memref<128x128xf32, #tpu.memory_space<vmem>>) attributes {dimension_semantics = [#tpu.dimension_semantics<parallel>], iteration_bounds = array<i64: 4>, scalar_prefetch = 0 : i64, scratch_operands = 0 : i64, tpu.core_type = #tpu.core_type<tc>, window_params = [{transform_indices = @transform_0, window_bounds = array<i64: 128, 128>}, {pipeline_mode = #tpu.pipeline_mode<synchronous>, transform_indices = @transform_1, window_bounds = array<i64: 1, 128>}, {pipeline_mode = #tpu.pipeline_mode<synchronous>, transform_indices = @transform_2, window_bounds = array<i64: 1, 128>}, {transform_indices = @transform_3, window_bounds = array<i64: 128, 128>}]} {
    %c0 = arith.constant 0 : index
    %c0_0 = arith.constant 0 : index
    %0 = vector.load %arg1[%c0, %c0_0] : memref<128x128xf32, #tpu.memory_space<vmem>>, vector<128x128xf32>
    %c0_1 = arith.constant 0 : index
    %c0_2 = arith.constant 0 : index
    %1 = vector.load %arg2[%c0_1, %c0_2] : memref<1x128xf32, #tpu.memory_space<vmem>>, vector<1x128xf32>
    %2 = vector.broadcast %1 : vector<1x128xf32> to vector<128x128xf32>
    %3 = arith.mulf %0, %2 : vector<128x128xf32>
    %c0_3 = arith.constant 0 : index
    %c0_4 = arith.constant 0 : index
    %4 = vector.load %arg3[%c0_3, %c0_4] : memref<1x128xf32, #tpu.memory_space<vmem>>, vector<1x128xf32>
    %5 = vector.broadcast %4 : vector<1x128xf32> to vector<128x128xf32>
    %6 = arith.addf %3, %5 : vector<128x128xf32>
    %cst = arith.constant 0.000000e+00 : f32
    %7 = vector.broadcast %cst : f32 to vector<128x128xf32>
    %8 = arith.maximumf %6, %7 : vector<128x128xf32>
    %c0_5 = arith.constant 0 : index
    %c0_6 = arith.constant 0 : index
    %9 = vector.load %arg4[%c0_5, %c0_6] : memref<128x128xf32, #tpu.memory_space<vmem>>, vector<128x128xf32>
    tpu.vector_store %arg4[%c0_5, %c0_6], %8 {strides = array<i32>} : memref<128x128xf32, #tpu.memory_space<vmem>>, vector<128x128xf32>,
    return
  }
  func.func @transform_0(%arg0: i32) -> (i32, i32) {
    %c0_i32 = arith.constant 0 : i32
    %c0_i32_0 = arith.constant 0 : i32
    return %arg0, %c0_i32 : i32, i32
  }
  func.func @transform_1(%arg0: i32) -> (i32, i32) {
    %c0_i32 = arith.constant 0 : i32
    %c0_i32_0 = arith.constant 0 : i32
    %c0_i32_1 = arith.constant 0 : i32
    return %c0_i32, %c0_i32_0 : i32, i32
  }
  func.func @transform_2(%arg0: i32) -> (i32, i32) {
    %c0_i32 = arith.constant 0 : i32
    %c0_i32_0 = arith.constant 0 : i32
    %c0_i32_1 = arith.constant 0 : i32
    return %c0_i32, %c0_i32_0 : i32, i32
  }
  func.func @transform_3(%arg0: i32) -> (i32, i32) {
    %c0_i32 = arith.constant 0 : i32
    %c0_i32_0 = arith.constant 0 : i32
    return %arg0, %c0_i32 : i32, i32
  }
}

module attributes {stable_mosaic.version = 11 : i64} {
  func.func @_conv_stats_kernel(%arg0: i32, %arg1: memref<128x128xbf16, #tpu.memory_space<vmem>>, %arg2: memref<128x128xbf16, #tpu.memory_space<vmem>>, %arg3: memref<128x128xf32, #tpu.memory_space<vmem>>, %arg4: memref<1x2x128xf32, #tpu.memory_space<vmem>>) attributes {dimension_semantics = [#tpu.dimension_semantics<parallel>], iteration_bounds = array<i64: 4>, scalar_prefetch = 0 : i64, scratch_operands = 0 : i64, tpu.core_type = #tpu.core_type<tc>, window_params = [{transform_indices = @transform_0, window_bounds = array<i64: 128, 128>}, {pipeline_mode = #tpu.pipeline_mode<synchronous>, transform_indices = @transform_1, window_bounds = array<i64: 128, 128>}, {transform_indices = @transform_2, window_bounds = array<i64: 128, 128>}, {transform_indices = @transform_3, window_bounds = array<i64: 1, 2, 128>}]} {
    %c0 = arith.constant 0 : index
    %c0_0 = arith.constant 0 : index
    %0 = vector.load %arg1[%c0, %c0_0] : memref<128x128xbf16, #tpu.memory_space<vmem>>, vector<128x128xbf16>
    %c0_1 = arith.constant 0 : index
    %c0_2 = arith.constant 0 : index
    %1 = vector.load %arg2[%c0_1, %c0_2] : memref<128x128xbf16, #tpu.memory_space<vmem>>, vector<128x128xbf16>
    %cst = arith.constant dense<0.000000e+00> : vector<128x128xf32>
    %2 = tpu.matmul %0, %1, %cst {dimension_numbers = #tpu.dot_dimension_numbers<[1], [0], [0], [1], [0, 0, 1, 1], [], []>} : vector<128x128xbf16>, vector<128x128xbf16>, vector<128x128xf32> -> vector<128x128xf32>
    %c0_3 = arith.constant 0 : index
    %c0_4 = arith.constant 0 : index
    %3 = vector.load %arg3[%c0_3, %c0_4] : memref<128x128xf32, #tpu.memory_space<vmem>>, vector<128x128xf32>
    tpu.vector_store %arg3[%c0_3, %c0_4], %2 {strides = array<i32>} : memref<128x128xf32, #tpu.memory_space<vmem>>, vector<128x128xf32>,
    %cst_5 = arith.constant dense<0.000000e+00> : vector<128xf32>
    %4 = vector.multi_reduction <add>, %2, %cst_5 [0] : vector<128x128xf32> to vector<128xf32>
    %5 = vector.shape_cast %4 : vector<128xf32> to vector<1x128xf32>
    %6 = arith.mulf %2, %2 : vector<128x128xf32>
    %cst_6 = arith.constant dense<0.000000e+00> : vector<128xf32>
    %7 = vector.multi_reduction <add>, %6, %cst_6 [0] : vector<128x128xf32> to vector<128xf32>
    %8 = vector.shape_cast %7 : vector<128xf32> to vector<1x128xf32>
    %9 = tpu.concatenate %5, %8 in 0 : vector<1x128xf32>, vector<1x128xf32> -> vector<2x128xf32>
    %10 = vector.shape_cast %9 : vector<2x128xf32> to vector<1x2x128xf32>
    %c0_7 = arith.constant 0 : index
    %c0_8 = arith.constant 0 : index
    %c0_9 = arith.constant 0 : index
    %11 = vector.load %arg4[%c0_7, %c0_8, %c0_9] : memref<1x2x128xf32, #tpu.memory_space<vmem>>, vector<1x2x128xf32>
    tpu.vector_store %arg4[%c0_7, %c0_8, %c0_9], %10 {strides = array<i32>} : memref<1x2x128xf32, #tpu.memory_space<vmem>>, vector<1x2x128xf32>,
    return
  }
  func.func @transform_0(%arg0: i32) -> (i32, i32) {
    %c0_i32 = arith.constant 0 : i32
    %c0_i32_0 = arith.constant 0 : i32
    return %arg0, %c0_i32 : i32, i32
  }
  func.func @transform_1(%arg0: i32) -> (i32, i32) {
    %c0_i32 = arith.constant 0 : i32
    %c0_i32_0 = arith.constant 0 : i32
    %c0_i32_1 = arith.constant 0 : i32
    return %c0_i32, %c0_i32_0 : i32, i32
  }
  func.func @transform_2(%arg0: i32) -> (i32, i32) {
    %c0_i32 = arith.constant 0 : i32
    %c0_i32_0 = arith.constant 0 : i32
    return %arg0, %c0_i32 : i32, i32
  }
  func.func @transform_3(%arg0: i32) -> (i32, i32, i32) {
    %c0_i32 = arith.constant 0 : i32
    %c0_i32_0 = arith.constant 0 : i32
    %c0_i32_1 = arith.constant 0 : i32
    return %arg0, %c0_i32, %c0_i32_0 : i32, i32, i32
  }
}

</mosaic_0001>

<bundles_post_ra>
// kernel: conv_bn_relu.3
= control target key start
LH: loop header
LB: loop body
LE: loop exit
PB: predicated region body
PF: predicated region fallthrough
CT: control target
= control target key end

     0   :  { %s373_s12 = smov 0   ;;  %s468_s0 = inlined_call_operand.vmem [shape: f32[512,128], index: 0, kind: input, shape index: {}]   ;;  %s469_s1 = inlined_call_operand.vmem [shape: f32[1,128], index: 1, kind: input, shape index: {}]   ;;  %s470_s2 = inlined_call_operand.vmem [shape: f32[1,128], index: 2, kind: input, shape index: {}]   ;;  %s471_s3 = inlined_call_operand.vmem [shape: f32[512,128], index: 3, kind: output, shape index: {}]  }
   0x1 LB: > { %s324_s13 = sadd.s32 4294967295, %s351_s12   ;;  %p328_p0 = scmp.ge.s32.totalorder %s351_s12, 1  ;;  %s351_s12 = sphi %s373_s12, %s13_s12  }
   0x2   : > { %p138_p1 = scmp.lt.s32.totalorder %s351_s12, 5 }
   0x4   : > { %p139_p2 = pnand %p328_p0, %p138_p1 }
   0x5   : > { %s329_s14 = sshll.u32 (!%p139_p2), %s324_s13, 4 }
   0x6   : > { %142 = sbr.rel (%p139_p2) target bundleno = 32 (0x20), region = 32  ;;  %p163_p3 = scmp.lt.s32.totalorder (!%p139_p2), %s329_s14, 63 }
   0xb   : > { %s473_s14 = smov (!%p163_p3, %s329_s14), 63  ;;  %v384_v0 = vld [vmem:[%s469_s1] ss:$0 sm:$0xff] }
   0xc   : > { %s330_s15 = sshll.u32 %s473_s14, 3  ;;  %v394_v1 = vld [vmem:[%s470_s2] ss:$0 sm:$0xff] }
   0xd   : > { %s389_s20 = scalar_lea.vmem %s468_s0, %s330_s15  ;;  %s417_s25 = scalar_lea.vmem %s471_s3, %s330_s15 }
   0xe   : > { %v174_v2 = vld [vmem:[%s389_s20] sm:$0xff]  ;;  %v175_v3 = vld [vmem:[%s389_s20 + $0x8] sm:$0xff]  ;;  %v176_v4 = vld [vmem:[%s389_s20 + $0x10] sm:$0xff] }
   0xf   : > { %v197_v5 = vmul.f32 %v384_v0, %v174_v2  ;;  %v198_v6 = vmul.f32 %v384_v0, %v175_v3  ;;  %v199_v7 = vmul.f32 %v384_v0, %v176_v4  ;;  %v177_v8 = vld [vmem:[%s389_s20 + $0x18] sm:$0xff]  ;;  %v178_v9 = vld [vmem:[%s389_s20 + $0x20] sm:$0xff]  ;;  %v179_v10 = vld [vmem:[%s389_s20 + $0x28] sm:$0xff] }
  0x10   : > { %v200_v11 = vmul.f32 %v384_v0, %v177_v8  ;;  %v201_v12 = vmul.f32 %v384_v0, %v178_v9  ;;  %v202_v13 = vmul.f32 %v384_v0, %v179_v10  ;;  %v180_v14 = vld [vmem:[%s389_s20 + $0x30] sm:$0xff]  ;;  %v181_v15 = vld [vmem:[%s389_s20 + $0x38] sm:$0xff]  ;;  %v182_v24 = vld [vmem:[%s389_s20 + $0x40] sm:$0xff] }
  0x11   : > { %v220_v16 = vadd.f32 %v394_v1, %v197_v5  ;;  %v221_v17 = vadd.f32 %v394_v1, %v198_v6  ;;  %v222_v18 = vadd.f32 %v394_v1, %v199_v7  ;;  %v203_v19 = vmul.f32 %v384_v0, %v180_v14  ;;  %v183_v25 = vld [vmem:[%s389_s20 + $0x48] sm:$0xff]  ;;  %v184_v26 = vld [vmem:[%s389_s20 + $0x50] sm:$0xff]  ;;  %v185_v31 = vld [vmem:[%s389_s20 + $0x58] sm:$0xff] }
  0x12   : > { %v223_v20 = vadd.f32 %v394_v1, %v200_v11  ;;  %v224_v21 = vadd.f32 %v394_v1, %v201_v12  ;;  %v225_v22 = vadd.f32 %v394_v1, %v202_v13  ;;  %v204_v23 = vmul.f32 %v384_v0, %v181_v15  ;;  %v186_v32 = vld [vmem:[%s389_s20 + $0x60] sm:$0xff]  ;;  %v187_v33 = vld [vmem:[%s389_s20 + $0x68] sm:$0xff]  ;;  %v188_v38 = vld [vmem:[%s389_s20 + $0x70] sm:$0xff] }
  0x13   : > { %v236_v27 = vmax.f32 %v220_v16, 0.0  ;;  %v237_v28 = vmax.f32 %v221_v17, 0.0  ;;  %v238_v29 = vmax.f32 %v222_v18, 0.0  ;;  %v226_v30 = vadd.f32 %v394_v1, %v203_v19  ;;  %v189_v43 = vld [vmem:[%s389_s20 + $0x78] sm:$0xff] }
  0x14   : > { %v239_v34 = vmax.f32 %v223_v20, 0.0  ;;  %v240_v35 = vmax.f32 %v224_v21, 0.0  ;;  %v241_v36 = vmax.f32 %v225_v22, 0.0  ;;  %v227_v37 = vadd.f32 %v394_v1, %v204_v23 }
  0x15   : > { %252 = vst [vmem:[%s417_s25] sm:$0xff] %v236_v27  ;;  %253 = vst [vmem:[%s417_s25 + $0x8] sm:$0xff] %v237_v28  ;;  %v242_v39 = vmax.f32 %v226_v30, 0.0  ;;  %v205_v40 = vmul.f32 %v384_v0, %v182_v24  ;;  %v206_v41 = vmul.f32 %v384_v0, %v183_v25  ;;  %v207_v42 = vmul.f32 %v384_v0, %v184_v26 }
  0x16   : > { %254 = vst [vmem:[%s417_s25 + $0x10] sm:$0xff] %v238_v29  ;;  %255 = vst [vmem:[%s417_s25 + $0x18] sm:$0xff] %v239_v34  ;;  %v243_v44 = vmax.f32 %v227_v37, 0.0  ;;  %v208_v45 = vmul.f32 %v384_v0, %v185_v31  ;;  %v209_v46 = vmul.f32 %v384_v0, %v186_v32  ;;  %v210_v47 = vmul.f32 %v384_v0, %v187_v33 }
  0x17   : > { %256 = vst [vmem:[%s417_s25 + $0x20] sm:$0xff] %v240_v35  ;;  %257 = vst [vmem:[%s417_s25 + $0x28] sm:$0xff] %v241_v36  ;;  %v228_v48 = vadd.f32 %v394_v1, %v205_v40  ;;  %v229_v49 = vadd.f32 %v394_v1, %v206_v41  ;;  %v230_v50 = vadd.f32 %v394_v1, %v207_v42 }
  0x18   : > { %258 = vst [vmem:[%s417_s25 + $0x30] sm:$0xff] %v242_v39  ;;  %v211_v51 = vmul.f32 %v384_v0, %v188_v38  ;;  %259 = vst [vmem:[%s417_s25 + $0x38] sm:$0xff] %v243_v44  ;;  %v231_v52 = vadd.f32 %v394_v1, %v208_v45  ;;  %v232_v53 = vadd.f32 %v394_v1, %v209_v46 }
  0x19   : > { %v233_v54 = vadd.f32 %v394_v1, %v210_v47  ;;  %v212_v55 = vmul.f32 %v384_v0, %v189_v43  ;;  %v244_v56 = vmax.f32 %v228_v48, 0.0  ;;  %v245_v57 = vmax.f32 %v229_v49, 0.0 }
  0x1a   : > { %v246_v58 = vmax.f32 %v230_v50, 0.0  ;;  %v234_v59 = vadd.f32 %v394_v1, %v211_v51  ;;  %v247_v60 = vmax.f32 %v231_v52, 0.0  ;;  %v248_v61 = vmax.f32 %v232_v53, 0.0 }
  0x1b   : > { %v249_v62 = vmax.f32 %v233_v54, 0.0  ;;  %v235_v63 = vadd.f32 %v394_v1, %v212_v55  ;;  %260 = vst [vmem:[%s417_s25 + $0x40] sm:$0xff] %v244_v56  ;;  %261 = vst [vmem:[%s417_s25 + $0x48] sm:$0xff] %v245_v57 }
  0x1c   : > { %262 = vst [vmem:[%s417_s25 + $0x50] sm:$0xff] %v246_v58  ;;  %v250_v2 = vmax.f32 %v234_v59, 0.0  ;;  %263 = vst [vmem:[%s417_s25 + $0x58] sm:$0xff] %v247_v60 }
  0x1d   : > { %264 = vst [vmem:[%s417_s25 + $0x60] sm:$0xff] %v248_v61  ;;  %265 = vst [vmem:[%s417_s25 + $0x68] sm:$0xff] %v249_v62  ;;  %v251_v0 = vmax.f32 %v235_v63, 0.0 }
  0x1e   : > { %266 = vst [vmem:[%s417_s25 + $0x70] sm:$0xff] %v250_v2 }
  0x1f   : > { %267 = vst [vmem:[%s417_s25 + $0x78] sm:$0xff] %v251_v0 }
  0x20 PF: > { %s13_s12 = sadd.s32 1, %s351_s12  }
  0x21   : > { %p10_p4 = scmp.ge.s32.totalorder %s13_s12, 6  }
  0x23   :  { %12 = sbr.rel (!%p10_p4) target bundleno = 1 (0x1), region = 62 }

// kernel: conv_bn_relu.2
= control target key start
LH: loop header
LB: loop body
LE: loop exit
PB: predicated region body
PF: predicated region fallthrough
CT: control target
= control target key end

     0   :  { %s719_s12 = smov 0   ;;  %s800_s0 = inlined_call_operand.vmem [shape: bf16[512,128], index: 0, kind: input, shape index: {}]   ;;  %s801_s1 = inlined_call_operand.vmem [shape: bf16[128,128], index: 1, kind: input, shape index: {}]   ;;  %s802_s2 = inlined_call_operand.vmem [shape: f32[512,128], index: 2, kind: output, shape index: {0}]   ;;  %s803_s3 = inlined_call_operand.vmem [shape: f32[4,2,128], index: 3, kind: output, shape index: {1}]  }
   0x1 LB: > { %s725_s13 = sadd.s32 4294967295, %s697_s12   ;;  %p579_p0 = scmp.ge.s32.totalorder %s697_s12, 1  ;;  %s697_s12 = sphi %s719_s12, %s14_s12  }
   0x2   : > { %p141_p1 = scmp.lt.s32.totalorder %s697_s12, 5 }
   0x4   : > { %p142_p2 = pnand %p579_p0, %p141_p1 }
   0x5   : > { %s580_s16 = sshll.u32 (!%p142_p2), %s725_s13, 4  ;;  %p181_p4 = scmp.lt.s32.totalorder (!%p142_p2), %s725_s13, 3 }
   0x6   : > { %145 = sbr.rel (%p142_p2) target bundleno = 289 (0x121), region = 28  ;;  %p170_p3 = scmp.lt.s32.totalorder (!%p142_p2), %s580_s16, 63 }
   0xb   : > { %v675_v0 = vld [vmem:[%s801_s1 + $0x38] sm:$0xff]   ;;  %v676_v1 = vld [vmem:[%s801_s1 + $0x30] sm:$0xff]   ;;  %s805_s16 = smov (!%p170_p3, %s580_s16), 63  ;;  %v677_v2 = vld [vmem:[%s801_s1 + $0x28] sm:$0xff]   ;;  %s807_s13 = smov (!%p181_p4, %s725_s13), 3  ;;  %vm485_vm0 = vcmask 1040384  }
   0xc   : > { %619 = vmatprep.subr.bf16.mxu0 %v675_v0  ;;  %651 = vmatprep.subr.bf16.mxu1 %v675_v0  ;;  %s581_s21 = sshll.u32 %s805_s16, 2  ;;  %v678_v3 = vld [vmem:[%s801_s1 + $0x20] sm:$0xff]   ;;  %v679_v5 = vld [vmem:[%s801_s1 + $0x18] sm:$0xff]   ;;  %v680_v7 = vld [vmem:[%s801_s1 + $0x10] sm:$0xff]   ;;  %s583_s8 = sshll.u32 %s805_s16, 3 }
   0xd   : > { %620 = vmatpush3.bf16.msra.mxu0 %v675_v0  ;;  %659 = vmatpush3.bf16.msra.mxu1 %v675_v0  ;;  %s745_s24 = scalar_lea.vmem %s800_s0, %s581_s21  ;;  %v681_v8 = vld [vmem:[%s801_s1 + $0x8] sm:$0xff]   ;;  %v682_v9 = vld [vmem:[%s801_s1] sm:$0xff]   ;;  %s774_s11 = scalar_lea.vmem %s802_s2, %s583_s8 }
   0xe   : > { %621 = vmatprep.subr.bf16.mxu0 %v676_v1  ;;  %652 = vmatprep.subr.bf16.mxu1 %v676_v1  ;;  %v683_v4 = vld [vmem:[%s745_s24] sm:$0xff]   ;;  %v684_v10 = vld [vmem:[%s745_s24 + $0x8] sm:$0xff]   ;;  %v685_v12 = vld [vmem:[%s745_s24 + $0x10] sm:$0xff]   ;;  %s584_s14 = sshll.u32 %s807_s13, 1 }
   0xf   : > { %635 = vmatprep.mubr.bf16.mxu0 %v683_v4  ;;  %v687_v6 = vld [vmem:[%s745_s24 + $0x20] sm:$0xff]   ;;  %v688_v11 = vld [vmem:[%s745_s24 + $0x28] sm:$0xff]   ;;  %v689_v13 = vld [vmem:[%s745_s24 + $0x30] sm:$0xff]   ;;  %s184_s17 = scalar_lea.vmem %s803_s3, %s584_s14 }
  0x10   : > { %643 = vmatprep.mubr.bf16.mxu1 %v687_v6  ;;  %v686_v14 = vld [vmem:[%s745_s24 + $0x18] sm:$0xff]  }
  0x11   : > { %622 = vmatpush3.bf16.msra.mxu0 %v676_v1  ;;  %660 = vmatpush3.bf16.msra.mxu1 %v676_v1  ;;  %v690_v15 = vld [vmem:[%s745_s24 + $0x38] sm:$0xff]  }
  0x12   : > { %623 = vmatprep.subr.bf16.mxu0 %v677_v2  ;;  %653 = vmatprep.subr.bf16.mxu1 %v677_v2 }
  0x15   : > { %624 = vmatpush3.bf16.msra.mxu0 %v677_v2  ;;  %661 = vmatpush3.bf16.msra.mxu1 %v677_v2 }
  0x16   : > { %625 = vmatprep.subr.bf16.mxu0 %v678_v3  ;;  %654 = vmatprep.subr.bf16.mxu1 %v678_v3 }
  0x19   : > { %626 = vmatpush3.bf16.msra.mxu0 %v678_v3  ;;  %662 = vmatpush3.bf16.msra.mxu1 %v678_v3 }
  0x1a   : > { %627 = vmatprep.subr.bf16.mxu0 %v679_v5  ;;  %655 = vmatprep.subr.bf16.mxu1 %v679_v5 }
  0x1d   : > { %628 = vmatpush3.bf16.msra.mxu0 %v679_v5  ;;  %663 = vmatpush3.bf16.msra.mxu1 %v679_v5 }
  0x1e   : > { %629 = vmatprep.subr.bf16.mxu0 %v680_v7  ;;  %656 = vmatprep.subr.bf16.mxu1 %v680_v7 }
  0x21   : > { %630 = vmatpush3.bf16.msra.mxu0 %v680_v7  ;;  %664 = vmatpush3.bf16.msra.mxu1 %v680_v7 }
  0x22   : > { %631 = vmatprep.subr.bf16.mxu0 %v681_v8  ;;  %657 = vmatprep.subr.bf16.mxu1 %v681_v8 }
  0x25   : > { %632 = vmatpush3.bf16.msra.mxu0 %v681_v8  ;;  %665 = vmatpush3.bf16.msra.mxu1 %v681_v8 }
  0x26   : > { %633 = vmatprep.subr.bf16.mxu0 %v682_v9  ;;  %658 = vmatprep.subr.bf16.mxu1 %v682_v9 }
  0x29   : > { %634 = vmatpush3.bf16.msra.mxu0 %v682_v9  ;;  %666 = vmatpush3.bf16.msra.mxu1 %v682_v9 }
  0x2c   : > { %636 = vmatmul.mubr.bf16.vlgmr.msra.gmra.mxu0 %v684_v10  ;;  %644 = vmatmul.mubr.bf16.vlgmr.msra.gmra.mxu1 %v688_v11 }
  0x2d   : > { %639 = vmatprep.mubr.bf16.mxu0 %v685_v12  ;;  %647 = vmatprep.mubr.bf16.mxu1 %v689_v13 }
  0x34   : > { %640 = vmatmul.mubr.bf16.gmra.mxu0 %v686_v14  ;;  %648 = vmatmul.mubr.bf16.gmra.mxu1 %v690_v15 }
  0xec   : > { %v637_v16 = vpop.f32.mrf.mxu0  ;;  %v645_v17 = vpop.f32.mrf.mxu1 }
  0xed   : > { %413 = vst [vmem:[%s774_s11 + $0x10] sm:$0xff] %v637_v16  ;;  %421 = vst [vmem:[%s774_s11 + $0x50] sm:$0xff] %v645_v17  ;;  %v450_v29 = vmul.f32 %v637_v16, %v637_v16  ;;  %v458_v59 = vmul.f32 %v645_v17, %v645_v17 }
  0xee   : > { %v348_v18 = vpop.f32.mrf.mxu0  ;;  %v380_v19 = vpop.f32.mrf.mxu1 }
  0xef   : > { %411 = vst [vmem:[%s774_s11] sm:$0xff] %v348_v18  ;;  %419 = vst [vmem:[%s774_s11 + $0x40] sm:$0xff] %v380_v19  ;;  %v448_v24 = vmul.f32 %v348_v18, %v348_v18  ;;  %v456_v53 = vmul.f32 %v380_v19, %v380_v19 }
  0xf0   : > { %v638_v20 = vpop.f32.mrf.mxu0  ;;  %v646_v21 = vpop.f32.mrf.mxu1 }
  0xf1   : > { %414 = vst [vmem:[%s774_s11 + $0x18] sm:$0xff] %v638_v20  ;;  %422 = vst [vmem:[%s774_s11 + $0x58] sm:$0xff] %v646_v21  ;;  %v451_v34 = vmul.f32 %v638_v20, %v638_v20  ;;  %v459_v62 = vmul.f32 %v646_v21, %v646_v21 }
  0xf2   : > { %v351_v22 = vpop.f32.mrf.mxu0  ;;  %v383_v23 = vpop.f32.mrf.mxu1 }
  0xf3   : > { %412 = vst [vmem:[%s774_s11 + $0x8] sm:$0xff] %v351_v22  ;;  %v427_v25 = vadd.f32 %v351_v22, %v348_v18  ;;  %v449_v26 = vmul.f32 %v351_v22, %v351_v22  ;;  %420 = vst [vmem:[%s774_s11 + $0x48] sm:$0xff] %v383_v23  ;;  %v457_v57 = vmul.f32 %v383_v23, %v383_v23 }
  0xf4   : > { %v641_v27 = vpop.f32.mrf.mxu0  ;;  %v649_v28 = vpop.f32.mrf.mxu1 }
  0xf5   : > { %v428_v30 = vadd.f32 %v637_v16, %v427_v25  ;;  %v464_v31 = vadd.f32 %v449_v26, %v448_v24  ;;  %417 = vst [vmem:[%s774_s11 + $0x30] sm:$0xff] %v641_v27  ;;  %425 = vst [vmem:[%s774_s11 + $0x70] sm:$0xff] %v649_v28  ;;  %v454_v47 = vmul.f32 %v641_v27, %v641_v27 }
  0xf6   : > { %v364_v32 = vpop.f32.mrf.mxu0  ;;  %v396_v33 = vpop.f32.mrf.mxu1  ;;  %v462_v7 = vmul.f32 %v649_v28, %v649_v28 }
  0xf7   : > { %v465_v35 = vadd.f32 %v464_v31, %v450_v29  ;;  %415 = vst [vmem:[%s774_s11 + $0x20] sm:$0xff] %v364_v32  ;;  %v429_v36 = vadd.f32 %v638_v20, %v428_v30  ;;  %423 = vst [vmem:[%s774_s11 + $0x60] sm:$0xff] %v396_v33  ;;  %v452_v40 = vmul.f32 %v364_v32, %v364_v32 }
  0xf8   : > { %v642_v37 = vpop.f32.mrf.mxu0  ;;  %v650_v38 = vpop.f32.mrf.mxu1  ;;  %v460_v2 = vmul.f32 %v396_v33, %v396_v33 }
  0xf9   : > { %v430_v39 = vadd.f32 %v429_v36, %v364_v32  ;;  %v466_v41 = vadd.f32 %v465_v35, %v451_v34  ;;  %418 = vst [vmem:[%s774_s11 + $0x38] sm:$0xff] %v642_v37  ;;  %426 = vst [vmem:[%s774_s11 + $0x78] sm:$0xff] %v650_v38  ;;  %v455_v50 = vmul.f32 %v642_v37, %v642_v37 }
  0xfa   : > { %v367_v42 = vpop.f32.mrf.mxu0  ;;  %v399_v43 = vpop.f32.mrf.mxu1  ;;  %v463_v10 = vmul.f32 %v650_v38, %v650_v38 }
  0xfb   : > { %v467_v44 = vadd.f32 %v466_v41, %v452_v40  ;;  %416 = vst [vmem:[%s774_s11 + $0x28] sm:$0xff] %v367_v42  ;;  %v431_v45 = vadd.f32 %v430_v39, %v367_v42  ;;  %v453_v46 = vmul.f32 %v367_v42, %v367_v42  ;;  %424 = vst [vmem:[%s774_s11 + $0x68] sm:$0xff] %v399_v43 }
  0xfc   : > { %v461_v6 = vmul.f32 %v399_v43, %v399_v43 }
  0xfd   : > { %v432_v48 = vadd.f32 %v641_v27, %v431_v45  ;;  %v468_v49 = vadd.f32 %v467_v44, %v453_v46 }
  0xff   : > { %v433_v51 = vadd.f32 %v642_v37, %v432_v48  ;;  %v469_v52 = vadd.f32 %v468_v49, %v454_v47 }
 0x101   : > { %v470_v54 = vadd.f32 %v469_v52, %v455_v50  ;;  %v434_v55 = vadd.f32 %v433_v51, %v380_v19 }
 0x103   : > { %v435_v56 = vadd.f32 %v434_v55, %v383_v23  ;;  %v471_v58 = vadd.f32 %v470_v54, %v456_v53 }
 0x105   : > { %v436_v60 = vadd.f32 %v645_v17, %v435_v56  ;;  %v472_v61 = vadd.f32 %v471_v58, %v457_v57 }
 0x107   : > { %v473_v63 = vadd.f32 %v472_v61, %v458_v59  ;;  %v437_v0 = vadd.f32 %v646_v21, %v436_v60 }
 0x109   : > { %v438_v1 = vadd.f32 %v437_v0, %v396_v33  ;;  %v474_v3 = vadd.f32 %v473_v63, %v459_v62 }
 0x10b   : > { %v475_v4 = vadd.f32 %v474_v3, %v460_v2  ;;  %v439_v5 = vadd.f32 %v438_v1, %v399_v43 }
 0x10d   : > { %v440_v8 = vadd.f32 %v649_v28, %v439_v5  ;;  %v476_v9 = vadd.f32 %v475_v4, %v461_v6 }
 0x10f   : > { %v441_v11 = vadd.f32 %v650_v38, %v440_v8  ;;  %v477_v12 = vadd.f32 %v476_v9, %v462_v7 }
 0x111   : > { %v442_v13 = vrot.slane %v441_v11, 4  ;;  %v478_v14 = vadd.f32 %v477_v12, %v463_v10 }
 0x113   : > { %v443_v15 = vadd.f32 %v442_v13, %v441_v11  ;;  %v479_v16 = vrot.slane %v478_v14, 4 }
 0x115   : > { %v444_v17 = vrot.slane %v443_v15, 2  ;;  %v480_v18 = vadd.f32 %v479_v16, %v478_v14 }
 0x117   : > { %v445_v19 = vadd.f32 %v444_v17, %v443_v15  ;;  %v481_v20 = vrot.slane %v480_v18, 2 }
 0x119   : > { %v446_v21 = vrot.slane %v445_v19, 1  ;;  %v482_v22 = vadd.f32 %v481_v20, %v480_v18 }
 0x11b   : > { %v483_v23 = vrot.slane %v482_v22, 1  ;;  %v447_v24 = vadd.f32 %v446_v21, %v445_v19 }
 0x11d   : > { %v484_v25 = vadd.f32 %v483_v23, %v482_v22 }
 0x11f   : > { %v486_v26 = vsel %vm485_vm0, %v447_v24, %v484_v25 }
 0x120   : > { %487 = vst [vmem:[%s184_s17] sm:$0x3] %v486_v26 }
 0x121 PF: > { %s14_s12 = sadd.s32 1, %s697_s12  }
 0x122   : > { %p11_p5 = scmp.ge.s32.totalorder %s14_s12, 6  }
 0x124   :  { %13 = sbr.rel (!%p11_p5) target bundleno = 1 (0x1), region = 70 }

</bundles_post_ra>
